<compile_context>
chip_gen: v5e
topology: v5e:2x2
jax: 0.10.0
libtpu: 0.0.40
codegen_flags: <defaults>
</compile_context>

<pallas_src>
import functools

import jax
import jax.numpy as jnp
from jax.experimental import pallas as pl
from jax.experimental.pallas import tpu as pltpu


def _round_up(x: int, m: int) -> int:
    return (x + m - 1) // m * m


def _self_output_kernel(x_ref, res_ref, wt_ref, b_ref, g_ref, beta_ref, o_ref,
                        *, eps: float):
    # dense: x @ W_t  (weight pre-transposed to (H_in, H_out) in the wrapper)
    # Native-dtype operands on the MXU, f32 accumulation.
    h = jnp.dot(x_ref[...], wt_ref[...], preferred_element_type=jnp.float32)

    # bias + residual (dropout -> identity in eval mode); epilogue in f32.
    # bias / gamma / beta arrive pre-cast to f32 from the wrapper.
    y = h + b_ref[...] + res_ref[...].astype(jnp.float32)

    # LayerNorm over hidden dim (population variance, matches PyTorch).
    mean = jnp.mean(y, axis=-1, keepdims=True)
    centered = y - mean
    var = jnp.mean(centered * centered, axis=-1, keepdims=True)
    out = centered * jax.lax.rsqrt(var + eps) * g_ref[...] + beta_ref[...]

    o_ref[...] = out.astype(o_ref.dtype)


def bert_self_output(hidden_states, input_tensor, w_dense, b_dense,
                     ln_gamma, ln_beta, *, eps=1e-12, tm=512):
    """hidden_states, input_tensor: (B, S, H). w_dense: (H_out, H_in) torch layout.

    Returns (B, S, H)."""
    B, S, H = hidden_states.shape
    dtype = hidden_states.dtype
    T = B * S

    x2 = hidden_states.reshape(T, H)
    r2 = input_tensor.reshape(T, H)

    # One-time transpose to (H_in, H_out): the kernel then runs the MXU in its
    # native (tm,K)@(K,N) orientation (no per-tile transposed-RHS handling).
    # TODO(synk): hoist this transpose to parameter-prep time so it is not
    # re-materialized on every forward call.
    w_t = jnp.asarray(w_dense).T
    if w_t.dtype != dtype:
        w_t = w_t.astype(dtype)  # avoid silent promotion to an f32 matmul

    # Epilogue parameters pre-cast to f32 in the wrapper.
    b2 = jnp.asarray(b_dense, jnp.float32).reshape(1, H)
    g2 = jnp.asarray(ln_gamma, jnp.float32).reshape(1, H)
    be2 = jnp.asarray(ln_beta, jnp.float32).reshape(1, H)

    # ---- row-tile selection --------------------------------------------------
    itemsize = jnp.dtype(dtype).itemsize
    row_align = {1: 32, 2: 16}.get(itemsize, 8)  # sublane packing per dtype

    tm = max(row_align,
             _round_up(min(int(tm), _round_up(T, row_align)), row_align))
    # Keep the grid >= 2 steps when T allows so both v7x TensorCores get work.
    if pl.cdiv(T, tm) < 2 and T > row_align:
        tm = _round_up(pl.cdiv(T, 2), row_align)

    # ---- generation-aware VMEM budget ----------------------------------------
    try:
        vmem_cap = int(pltpu.get_tpu_info().vmem_capacity_bytes)
    except Exception:
        vmem_cap = 64 << 20  # conservative fallback (v7x per-TC VMEM)
    # Headroom below physical VMEM (compiler scratch / semaphores); never ask
    # for more than ~100 MiB even on 128-MiB v5e/v6e parts.
    vmem_cap = max(24 << 20, min(vmem_cap - (12 << 20), 100 << 20))

    ws = jnp.dtype(w_t.dtype).itemsize

    def _vmem_needed(t):
        tiles = 2 * 3 * t * H * itemsize     # double-buffered x / res / out tiles
        weight = H * H * ws                  # single-buffered resident weight
        vecs = 3 * 2 * H * 4                 # bias / gamma / beta
        f32_tmp = 8 * t * H * 4              # f32 matmul acc + LN intermediates
        return tiles + weight + vecs + f32_tmp + (4 << 20)

    # Shrink the row tile if the budget would not fit (weight stays resident).
    while tm > row_align and _vmem_needed(tm) > vmem_cap:
        tm = max(row_align, _round_up(tm // 2, row_align))
    # TODO(synk): for very large H (resident HxH weight alone exceeding the
    # per-core VMEM, e.g. H>=4096 on v7x) add a fallback that tiles the weight
    # over the output dim with a two-pass LayerNorm.
    vmem_bytes = int(min(_vmem_needed(tm), vmem_cap))

    grid = (pl.cdiv(T, tm),)  # ragged tail handled by Pallas masked tail stores

    kernel = functools.partial(_self_output_kernel, eps=float(eps))

    def _call(single_buffer_consts: bool):
        def const_spec(shape):
            idx = lambda i, _n=len(shape): (0,) * _n
            if single_buffer_consts:
                return pl.BlockSpec(shape, idx, pipeline_mode=pl.Buffered(1))
            return pl.BlockSpec(shape, idx)

        return pl.pallas_call(
            kernel,
            out_shape=jax.ShapeDtypeStruct((T, H), dtype),
            grid_spec=pltpu.PrefetchScalarGridSpec(
                num_scalar_prefetch=0,
                grid=grid,
                in_specs=[
                    pl.BlockSpec((tm, H), lambda i: (i, 0)),  # hidden_states tile
                    pl.BlockSpec((tm, H), lambda i: (i, 0)),  # residual tile
                    const_spec((H, H)),                       # dense weight (resident)
                    const_spec((1, H)),                       # dense bias (f32)
                    const_spec((1, H)),                       # LN gamma   (f32)
                    const_spec((1, H)),                       # LN beta    (f32)
                ],
                out_specs=pl.BlockSpec((tm, H), lambda i: (i, 0)),
            ),
            compiler_params=pltpu.CompilerParams(
                dimension_semantics=("parallel",),
                vmem_limit_bytes=vmem_bytes),
        )(x2, r2, w_t, b2, g2, be2)

    try:
        out2 = _call(True)
    except Exception:
        # Fallback: default (double) buffering for the constant operands.
        out2 = _call(False)

    return out2.reshape(B, S, H)


def _reference(hidden_states, input_tensor, w_dense, b_dense, ln_gamma,
               ln_beta, eps):
    h = hidden_states @ w_dense.T + b_dense
    y = h + input_tensor
    mu = y.mean(-1, keepdims=True)
    var = ((y - mu) ** 2).mean(-1, keepdims=True)
    return (y - mu) / jnp.sqrt(var + eps) * ln_gamma + ln_beta


if __name__ == "__main__":
    eps = 1e-12
    key = jax.random.PRNGKey(0)
    k1, k2, k3, k4 = jax.random.split(key, 4)

    # Small synthetic config consistent with BertSelfOutput's forward.
    B, S, H = 2, 8, 32
    hidden_states = jax.random.normal(k1, (B, S, H), dtype=jnp.float32)
    input_tensor = jax.random.normal(k2, (B, S, H), dtype=jnp.float32)

    # Deterministic parameter init (initializer_range-style normal for dense).
    w_dense = 0.02 * jax.random.normal(k3, (H, H), dtype=jnp.float32)  # (out, in) torch layout
    b_dense = 0.01 * jax.random.normal(k4, (H,), dtype=jnp.float32)
    ln_gamma = jnp.ones((H,), dtype=jnp.float32)
    ln_beta = jnp.zeros((H,), dtype=jnp.float32)

    out = bert_self_output(hidden_states, input_tensor,
                           w_dense, b_dense, ln_gamma, ln_beta, eps=eps)
    out = jax.block_until_ready(out)
    ref_out = _reference(hidden_states, input_tensor, w_dense, b_dense,
                         ln_gamma, ln_beta, eps)
    assert out.shape == (B, S, H)
    assert jnp.allclose(out, ref_out, atol=1e-5, rtol=1e-5), "mismatch vs reference"

    # Second check: token count not a multiple of the row tile (exercises the
    # ragged tail block with masked stores -- no pad/slice copies anymore).
    B2, S2 = 2, 5
    hs2 = jax.random.normal(k1, (B2, S2, H), dtype=jnp.float32)
    it2 = jax.random.normal(k2, (B2, S2, H), dtype=jnp.float32)
    out2 = bert_self_output(hs2, it2, w_dense, b_dense, ln_gamma, ln_beta,
                            eps=eps)
    out2 = jax.block_until_ready(out2)
    ref2 = _reference(hs2, it2, w_dense, b_dense, ln_gamma, ln_beta, eps)
    assert out2.shape == (B2, S2, H)
    assert jnp.allclose(out2, ref2, atol=1e-5, rtol=1e-5), "mismatch vs reference (ragged)"

    print("KERNEL_OK")
</pallas_src>

<mosaic_0001>
module attributes {stable_mosaic.version = 11 : i64} {
  func.func @_self_output_kernel(%arg0: i32, %arg1: memref<8x32xf32, #tpu.memory_space<vmem>>, %arg2: memref<8x32xf32, #tpu.memory_space<vmem>>, %arg3: memref<32x32xf32, #tpu.memory_space<vmem>>, %arg4: memref<1x32xf32, #tpu.memory_space<vmem>>, %arg5: memref<1x32xf32, #tpu.memory_space<vmem>>, %arg6: memref<1x32xf32, #tpu.memory_space<vmem>>, %arg7: memref<8x32xf32, #tpu.memory_space<vmem>>) attributes {dimension_semantics = [#tpu.dimension_semantics<parallel>], iteration_bounds = array<i64: 2>, scalar_prefetch = 0 : i64, scratch_operands = 0 : i64, tpu.core_type = #tpu.core_type<tc>, window_params = [{transform_indices = @transform_0, window_bounds = array<i64: 8, 32>}, {transform_indices = @transform_1, window_bounds = array<i64: 8, 32>}, {pipeline_mode = #tpu.pipeline_mode<synchronous>, transform_indices = @transform_2, window_bounds = array<i64: 32, 32>}, {pipeline_mode = #tpu.pipeline_mode<synchronous>, transform_indices = @transform_3, window_bounds = array<i64: 1, 32>}, {pipeline_mode = #tpu.pipeline_mode<synchronous>, transform_indices = @transform_4, window_bounds = array<i64: 1, 32>}, {pipeline_mode = #tpu.pipeline_mode<synchronous>, transform_indices = @transform_5, window_bounds = array<i64: 1, 32>}, {transform_indices = @transform_6, window_bounds = array<i64: 8, 32>}]} {
    %c0 = arith.constant 0 : index
    %c0_0 = arith.constant 0 : index
    %0 = vector.load %arg1[%c0, %c0_0] : memref<8x32xf32, #tpu.memory_space<vmem>>, vector<8x32xf32>
    %c0_1 = arith.constant 0 : index
    %c0_2 = arith.constant 0 : index
    %1 = vector.load %arg3[%c0_1, %c0_2] : memref<32x32xf32, #tpu.memory_space<vmem>>, vector<32x32xf32>
    %cst = arith.constant dense<0.000000e+00> : vector<8x32xf32>
    %2 = tpu.matmul %0, %1, %cst {dimension_numbers = #tpu.dot_dimension_numbers<[1], [0], [0], [1], [0, 0, 1, 1], [], []>} : vector<8x32xf32>, vector<32x32xf32>, vector<8x32xf32> -> vector<8x32xf32>
    %c0_3 = arith.constant 0 : index
    %c0_4 = arith.constant 0 : index
    %3 = vector.load %arg4[%c0_3, %c0_4] : memref<1x32xf32, #tpu.memory_space<vmem>>, vector<1x32xf32>
    %4 = vector.broadcast %3 : vector<1x32xf32> to vector<8x32xf32>
    %5 = arith.addf %2, %4 : vector<8x32xf32>
    %c0_5 = arith.constant 0 : index
    %c0_6 = arith.constant 0 : index
    %6 = vector.load %arg2[%c0_5, %c0_6] : memref<8x32xf32, #tpu.memory_space<vmem>>, vector<8x32xf32>
    %7 = arith.addf %5, %6 : vector<8x32xf32>
    %cst_7 = arith.constant dense<0.000000e+00> : vector<8xf32>
    %8 = vector.multi_reduction <add>, %7, %cst_7 [1] : vector<8x32xf32> to vector<8xf32>
    %9 = vector.shape_cast %8 : vector<8xf32> to vector<8x1xf32>
    %cst_8 = arith.constant 3.200000e+01 : f32
    %10 = vector.broadcast %cst_8 : f32 to vector<8x1xf32>
    %11 = arith.divf %9, %10 : vector<8x1xf32>
    %12 = vector.broadcast %11 : vector<8x1xf32> to vector<8x32xf32>
    %13 = arith.subf %7, %12 : vector<8x32xf32>
    %14 = arith.mulf %13, %13 : vector<8x32xf32>
    %cst_9 = arith.constant dense<0.000000e+00> : vector<8xf32>
    %15 = vector.multi_reduction <add>, %14, %cst_9 [1] : vector<8x32xf32> to vector<8xf32>
    %16 = vector.shape_cast %15 : vector<8xf32> to vector<8x1xf32>
    %cst_10 = arith.constant 3.200000e+01 : f32
    %17 = vector.broadcast %cst_10 : f32 to vector<8x1xf32>
    %18 = arith.divf %16, %17 : vector<8x1xf32>
    %cst_11 = arith.constant 9.99999996E-13 : f32
    %19 = vector.broadcast %cst_11 : f32 to vector<8x1xf32>
    %20 = arith.addf %18, %19 : vector<8x1xf32>
    %21 = math.rsqrt %20 : vector<8x1xf32>
    %22 = vector.broadcast %21 : vector<8x1xf32> to vector<8x32xf32>
    %23 = arith.mulf %13, %22 : vector<8x32xf32>
    %c0_12 = arith.constant 0 : index
    %c0_13 = arith.constant 0 : index
    %24 = vector.load %arg5[%c0_12, %c0_13] : memref<1x32xf32, #tpu.memory_space<vmem>>, vector<1x32xf32>
    %25 = vector.broadcast %24 : vector<1x32xf32> to vector<8x32xf32>
    %26 = arith.mulf %23, %25 : vector<8x32xf32>
    %c0_14 = arith.constant 0 : index
    %c0_15 = arith.constant 0 : index
    %27 = vector.load %arg6[%c0_14, %c0_15] : memref<1x32xf32, #tpu.memory_space<vmem>>, vector<1x32xf32>
    %28 = vector.broadcast %27 : vector<1x32xf32> to vector<8x32xf32>
    %29 = arith.addf %26, %28 : vector<8x32xf32>
    %c0_16 = arith.constant 0 : index
    %c0_17 = arith.constant 0 : index
    %30 = vector.load %arg7[%c0_16, %c0_17] : memref<8x32xf32, #tpu.memory_space<vmem>>, vector<8x32xf32>
    tpu.vector_store %arg7[%c0_16, %c0_17], %29 {strides = array<i32>} : memref<8x32xf32, #tpu.memory_space<vmem>>, vector<8x32xf32>,
    return
  }
  func.func @transform_0(%arg0: i32) -> (i32, i32) {
    %c0_i32 = arith.constant 0 : i32
    %c0_i32_0 = arith.constant 0 : i32
    return %arg0, %c0_i32 : i32, i32
  }
  func.func @transform_1(%arg0: i32) -> (i32, i32) {
    %c0_i32 = arith.constant 0 : i32
    %c0_i32_0 = arith.constant 0 : i32
    return %arg0, %c0_i32 : i32, i32
  }
  func.func @transform_2(%arg0: i32) -> (i32, i32) {
    %c0_i32 = arith.constant 0 : i32
    %c0_i32_0 = arith.constant 0 : i32
    %c0_i32_1 = arith.constant 0 : i32
    return %c0_i32, %c0_i32_0 : i32, i32
  }
  func.func @transform_3(%arg0: i32) -> (i32, i32) {
    %c0_i32 = arith.constant 0 : i32
    %c0_i32_0 = arith.constant 0 : i32
    %c0_i32_1 = arith.constant 0 : i32
    return %c0_i32, %c0_i32_0 : i32, i32
  }
  func.func @transform_4(%arg0: i32) -> (i32, i32) {
    %c0_i32 = arith.constant 0 : i32
    %c0_i32_0 = arith.constant 0 : i32
    %c0_i32_1 = arith.constant 0 : i32
    return %c0_i32, %c0_i32_0 : i32, i32
  }
  func.func @transform_5(%arg0: i32) -> (i32, i32) {
    %c0_i32 = arith.constant 0 : i32
    %c0_i32_0 = arith.constant 0 : i32
    %c0_i32_1 = arith.constant 0 : i32
    return %c0_i32, %c0_i32_0 : i32, i32
  }
  func.func @transform_6(%arg0: i32) -> (i32, i32) {
    %c0_i32 = arith.constant 0 : i32
    %c0_i32_0 = arith.constant 0 : i32
    return %arg0, %c0_i32 : i32, i32
  }
}

module attributes {stable_mosaic.version = 11 : i64} {
  func.func @_self_output_kernel(%arg0: i32, %arg1: memref<8x32xf32, #tpu.memory_space<vmem>>, %arg2: memref<8x32xf32, #tpu.memory_space<vmem>>, %arg3: memref<32x32xf32, #tpu.memory_space<vmem>>, %arg4: memref<1x32xf32, #tpu.memory_space<vmem>>, %arg5: memref<1x32xf32, #tpu.memory_space<vmem>>, %arg6: memref<1x32xf32, #tpu.memory_space<vmem>>, %arg7: memref<8x32xf32, #tpu.memory_space<vmem>>) attributes {dimension_semantics = [#tpu.dimension_semantics<parallel>], iteration_bounds = array<i64: 2>, scalar_prefetch = 0 : i64, scratch_operands = 0 : i64, tpu.core_type = #tpu.core_type<tc>, window_params = [{transform_indices = @transform_0, window_bounds = array<i64: 8, 32>}, {transform_indices = @transform_1, window_bounds = array<i64: 8, 32>}, {pipeline_mode = #tpu.pipeline_mode<synchronous>, transform_indices = @transform_2, window_bounds = array<i64: 32, 32>}, {pipeline_mode = #tpu.pipeline_mode<synchronous>, transform_indices = @transform_3, window_bounds = array<i64: 1, 32>}, {pipeline_mode = #tpu.pipeline_mode<synchronous>, transform_indices = @transform_4, window_bounds = array<i64: 1, 32>}, {pipeline_mode = #tpu.pipeline_mode<synchronous>, transform_indices = @transform_5, window_bounds = array<i64: 1, 32>}, {transform_indices = @transform_6, window_bounds = array<i64: 8, 32>}]} {
    %c0 = arith.constant 0 : index
    %c0_0 = arith.constant 0 : index
    %0 = vector.load %arg1[%c0, %c0_0] : memref<8x32xf32, #tpu.memory_space<vmem>>, vector<8x32xf32>
    %c0_1 = arith.constant 0 : index
    %c0_2 = arith.constant 0 : index
    %1 = vector.load %arg3[%c0_1, %c0_2] : memref<32x32xf32, #tpu.memory_space<vmem>>, vector<32x32xf32>
    %cst = arith.constant dense<0.000000e+00> : vector<8x32xf32>
    %2 = tpu.matmul %0, %1, %cst {dimension_numbers = #tpu.dot_dimension_numbers<[1], [0], [0], [1], [0, 0, 1, 1], [], []>} : vector<8x32xf32>, vector<32x32xf32>, vector<8x32xf32> -> vector<8x32xf32>
    %c0_3 = arith.constant 0 : index
    %c0_4 = arith.constant 0 : index
    %3 = vector.load %arg4[%c0_3, %c0_4] : memref<1x32xf32, #tpu.memory_space<vmem>>, vector<1x32xf32>
    %4 = vector.broadcast %3 : vector<1x32xf32> to vector<8x32xf32>
    %5 = arith.addf %2, %4 : vector<8x32xf32>
    %c0_5 = arith.constant 0 : index
    %c0_6 = arith.constant 0 : index
    %6 = vector.load %arg2[%c0_5, %c0_6] : memref<8x32xf32, #tpu.memory_space<vmem>>, vector<8x32xf32>
    %7 = arith.addf %5, %6 : vector<8x32xf32>
    %cst_7 = arith.constant dense<0.000000e+00> : vector<8xf32>
    %8 = vector.multi_reduction <add>, %7, %cst_7 [1] : vector<8x32xf32> to vector<8xf32>
    %9 = vector.shape_cast %8 : vector<8xf32> to vector<8x1xf32>
    %cst_8 = arith.constant 3.200000e+01 : f32
    %10 = vector.broadcast %cst_8 : f32 to vector<8x1xf32>
    %11 = arith.divf %9, %10 : vector<8x1xf32>
    %12 = vector.broadcast %11 : vector<8x1xf32> to vector<8x32xf32>
    %13 = arith.subf %7, %12 : vector<8x32xf32>
    %14 = arith.mulf %13, %13 : vector<8x32xf32>
    %cst_9 = arith.constant dense<0.000000e+00> : vector<8xf32>
    %15 = vector.multi_reduction <add>, %14, %cst_9 [1] : vector<8x32xf32> to vector<8xf32>
    %16 = vector.shape_cast %15 : vector<8xf32> to vector<8x1xf32>
    %cst_10 = arith.constant 3.200000e+01 : f32
    %17 = vector.broadcast %cst_10 : f32 to vector<8x1xf32>
    %18 = arith.divf %16, %17 : vector<8x1xf32>
    %cst_11 = arith.constant 9.99999996E-13 : f32
    %19 = vector.broadcast %cst_11 : f32 to vector<8x1xf32>
    %20 = arith.addf %18, %19 : vector<8x1xf32>
    %21 = math.rsqrt %20 : vector<8x1xf32>
    %22 = vector.broadcast %21 : vector<8x1xf32> to vector<8x32xf32>
    %23 = arith.mulf %13, %22 : vector<8x32xf32>
    %c0_12 = arith.constant 0 : index
    %c0_13 = arith.constant 0 : index
    %24 = vector.load %arg5[%c0_12, %c0_13] : memref<1x32xf32, #tpu.memory_space<vmem>>, vector<1x32xf32>
    %25 = vector.broadcast %24 : vector<1x32xf32> to vector<8x32xf32>
    %26 = arith.mulf %23, %25 : vector<8x32xf32>
    %c0_14 = arith.constant 0 : index
    %c0_15 = arith.constant 0 : index
    %27 = vector.load %arg6[%c0_14, %c0_15] : memref<1x32xf32, #tpu.memory_space<vmem>>, vector<1x32xf32>
    %28 = vector.broadcast %27 : vector<1x32xf32> to vector<8x32xf32>
    %29 = arith.addf %26, %28 : vector<8x32xf32>
    %c0_16 = arith.constant 0 : index
    %c0_17 = arith.constant 0 : index
    %30 = vector.load %arg7[%c0_16, %c0_17] : memref<8x32xf32, #tpu.memory_space<vmem>>, vector<8x32xf32>
    tpu.vector_store %arg7[%c0_16, %c0_17], %29 {strides = array<i32>} : memref<8x32xf32, #tpu.memory_space<vmem>>, vector<8x32xf32>,
    return
  }
  func.func @transform_0(%arg0: i32) -> (i32, i32) {
    %c0_i32 = arith.constant 0 : i32
    %c0_i32_0 = arith.constant 0 : i32
    return %arg0, %c0_i32 : i32, i32
  }
  func.func @transform_1(%arg0: i32) -> (i32, i32) {
    %c0_i32 = arith.constant 0 : i32
    %c0_i32_0 = arith.constant 0 : i32
    return %arg0, %c0_i32 : i32, i32
  }
  func.func @transform_2(%arg0: i32) -> (i32, i32) {
    %c0_i32 = arith.constant 0 : i32
    %c0_i32_0 = arith.constant 0 : i32
    %c0_i32_1 = arith.constant 0 : i32
    return %c0_i32, %c0_i32_0 : i32, i32
  }
  func.func @transform_3(%arg0: i32) -> (i32, i32) {
    %c0_i32 = arith.constant 0 : i32
    %c0_i32_0 = arith.constant 0 : i32
    %c0_i32_1 = arith.constant 0 : i32
    return %c0_i32, %c0_i32_0 : i32, i32
  }
  func.func @transform_4(%arg0: i32) -> (i32, i32) {
    %c0_i32 = arith.constant 0 : i32
    %c0_i32_0 = arith.constant 0 : i32
    %c0_i32_1 = arith.constant 0 : i32
    return %c0_i32, %c0_i32_0 : i32, i32
  }
  func.func @transform_5(%arg0: i32) -> (i32, i32) {
    %c0_i32 = arith.constant 0 : i32
    %c0_i32_0 = arith.constant 0 : i32
    %c0_i32_1 = arith.constant 0 : i32
    return %c0_i32, %c0_i32_0 : i32, i32
  }
  func.func @transform_6(%arg0: i32) -> (i32, i32) {
    %c0_i32 = arith.constant 0 : i32
    %c0_i32_0 = arith.constant 0 : i32
    return %arg0, %c0_i32 : i32, i32
  }
}

</mosaic_0001>

<bundles_post_ra>
// kernel: tpu_custom_call.1
= control target key start
LH: loop header
LB: loop body
LE: loop exit
PB: predicated region body
PF: predicated region fallthrough
CT: control target
= control target key end

     0   :  { %s995_s0 = inlined_call_operand.hbm [shape: f32[16,32], index: 0, kind: input, shape index: {}]   ;;  %s996_s1 = inlined_call_operand.hbm [shape: f32[16,32], index: 1, kind: input, shape index: {}]   ;;  %s997_s2 = inlined_call_operand.hbm [shape: f32[32,32], index: 2, kind: input, shape index: {}]   ;;  %s998_s3 = inlined_call_operand.vmem [shape: f32[1,32], index: 3, kind: input, shape index: {}]   ;;  %s999_s4 = inlined_call_operand.vmem [shape: f32[1,32], index: 4, kind: input, shape index: {}]   ;;  %s1000_s5 = inlined_call_operand.vmem [shape: f32[1,32], index: 5, kind: input, shape index: {}]   ;;  %s1001_s6 = inlined_call_operand.hbm [shape: f32[16,32], index: 6, kind: output, shape index: {}]  }
   0x1   :  { %1006 = sst [smem:[#allocation17_spill]] %s997_s2 }
   0x2   :  { %11 = vsyncpa [#allocation3], 0 }
   0x3   :  { %13 = vsyncpa [#allocation3 + $0x1], 0 }
   0x4   :  { %14 = vsyncpa [#allocation6], 0 }
   0x5   :  { %16 = vsyncpa [#allocation6 + $0x1], 0 }
   0x6   :  { %17 = vsyncpa [#allocation4], 0 }
   0x7   :  { %19 = vsyncpa [#allocation4 + $0x1], 0  ;;  %s812_s21 = smov 0   ;;  %s814_s22 = smov 0  }
   0x8   :  { %s816_s23 = smov 0   ;;  %s818_s24 = smov 0  }
   0x9 LB: > { %1007 = sst [smem:[#allocation13_spill]] %s767_s23  ;;  %s836_s28 = sadd.s32 4294967295, %s771_s24   ;;  %s771_s24 = sphi %s818_s24, %s1020_s24   ;;  %s767_s23 = sphi %s816_s23, %s1022_s23   ;;  %s763_s22 = sphi %s814_s22, %s1024_s22   ;;  %s759_s21 = sphi %s812_s21, %s1023_s21  }
   0xa   : > { %1008 = sst [smem:[#allocation14_spill]] %s771_s24  ;;  %p518_p0 = scmp.ge.s32.totalorder %s771_s24, 1 }
   0xb   : > { %s1009_s2 = sld [smem:[#allocation17_spill]]  ;;  %p46_p1 = scmp.eq.s32.totalorder %s836_s28, 0 }
   0xc   : > { %p192_p2 = scmp.lt.s32.totalorder %s771_s24, 3  ;;  %s773_s30 = smov [#allocation7]  }
   0xd   : > { %s205_s7 = sshll.u32 %s773_s30, 4  ;;  %s774_s8 = smov 128   ;;  %s206_s7 = int_to_ptr.vmem [resolvable:$true] %s205_s7 }
   0xe   : > { %p841_p3 = pnand %p518_p0, %p192_p2  ;;  %s775_s9 = smov 8  }
   0xf   : > { %s517_s10 = sadd.s32 4294967294, %s771_s24   ;;  %s852_s11 = sadd.s32 1, %s771_s24  }
  0x10   : > { %p545_p4 = pneg %p841_p3  ;;  %1011 = sst [smem:[#allocation15_spill]] %s852_s11 }
  0x11   : > { %s203_s27 = sshll.u32 %s1009_s2, 4  ;;  %s32_s12 = sadd.s32 1, %s767_s23  ;;  %s204_s27 = int_to_ptr.hbm [resolvable:$true] %s203_s27 }
  0x12   : > { %p546_p6 = pnand %p545_p4, %p46_p1  ;;  %s29_s13 = ssub.s32 %s771_s24, %s852_s11 }
  0x13   : > { %p39_p7 = scmp.ne.s32.totalorder %s767_s23, %s763_s22  ;;  %p30_p8 = scmp.eq.s32.totalorder %s29_s13, 0 }
  0x14   : > { %548 = dma.hbm_to_vmem [thread:$0]  (!%p546_p6), %s204_s27, 512, %s206_s7, [#allocation6], %s774_s8, %s774_s8, %s775_s9  }
  0x15   : > { %p40_p9 = scmp.eq.s32.totalorder %s771_s24, 0  ;;  %p45_p10 = scmp.ne.s32.totalorder %s763_s22, %s759_s21 }
  0x16   : > { %p179_p11 = scmp.eq.s32.totalorder %s836_s28, 1  ;;  %p185_p2 = scmp.eq.s32.totalorder %s517_s10, 1 }
  0x17   : > { %s864_s14 = scalar_select %p30_p8, %s767_s23, %s32_s12  }
  0x18   : > { %p866_p12 = por %p40_p9, %p39_p7  ;;  %p872_p13 = por %p46_p1, %p45_p10 }
  0x19   : > { %1012 = sst [smem:[#allocation16_spill]] %s864_s14  ;;  %p876_p0 = por %p179_p11, %p39_p7 }
  0x1a   : > { %p561_p4 = scmp.lt.s32.totalorder %s771_s24, 2  ;;  %s228_s18 = sand.u32 1, %s767_s23  }
  0x1b   : > { %p882_p6 = por %p185_p2, %p45_p10  ;;  %s521_s20 = sshll.u32 %s228_s18, 3 }
  0x1c   : > { %s522_s25 = sshll.u32 %s771_s24, 3  ;;  %s232_s8 = scalar_lea.vmem [#allocation2], %s521_s20 }
  0x1d   : > { %s236_s30 = scalar_lea.hbm %s995_s0, %s522_s25  ;;  %s240_s9 = sshll.u32 %s232_s8, 4  ;;  %s241_s9 = int_to_ptr.vmem [resolvable:$true] %s240_s9 }
  0x1e   : > { %s238_s7 = sshll.u32 %s236_s30, 4  ;;  %p892_p7 = pnand %p561_p4, %p866_p12  ;;  %s239_s7 = int_to_ptr.hbm [resolvable:$true] %s238_s7 }
  0x1f   : > { %s255_s2 = scalar_lea.hbm %s996_s1, %s522_s25  ;;  %s247_s14 = sand.u32 1, %s771_s24  }
  0x20   : > { %s229_s23 = scalar_lea.sflag [#allocation3], %s228_s18  ;;  %s637_s26 = sshra.s32 %s239_s7, 4  ;;  %s638_s26 = int_to_ptr.hbm [resolvable:$true] %s637_s26 }
  0x21   : > { %s639_s27 = scalar_lea.hbm %s638_s26, 8  ;;  %p641_p9 = pneg %p892_p7 }
  0x22   : > { %p640_p8 = scmp.ne.s32.totalorder %s638_s26, %s639_s27  ;;  %s644_s8 = scalar_lea.hbm %s995_s0, 16 }
  0x23   : > { %p645_p12 = scmp.lt.s32.totalorder %s638_s26, %s995_s0  ;;  %p646_p2 = scmp.lt.s32.totalorder %s644_s8, %s639_s27 }
  0x24   : > { %p642_p10 = pnand %p641_p9, %p640_p8 }
  0x25   : > { %p647_p4 = por %p646_p2, %p645_p12 }
  0x26   : > { %p643_p11 = pneg %p642_p10 }
  0x28   : > { %p648_p5 = pnand %p647_p4, %p643_p11 }
  0x2a   : > { %651 = shalt.err (!%p648_p5)
}
  0x2b   : > { %552 = dma.hbm_to_vmem [thread:$0]  (!%p892_p7), %s239_s7, 128, %s241_s9, %s229_s23  }
  0x2c   : > { %s257_s18 = sshll.u32 %s255_s2, 4  ;;  %s251_s25 = scalar_lea.vmem [#allocation5], %s521_s20  ;;  %s258_s18 = int_to_ptr.hbm [resolvable:$true] %s257_s18 }
  0x2d   : > { %s259_s11 = sshll.u32 %s251_s25, 4  ;;  %s248_s24 = scalar_lea.sflag [#allocation6], %s247_s14  ;;  %s260_s11 = int_to_ptr.vmem [resolvable:$true] %s259_s11 }
  0x2e   : > { %s667_s15 = sshra.s32 %s258_s18, 4  ;;  %s674_s8 = scalar_lea.hbm %s996_s1, 16  ;;  %s668_s15 = int_to_ptr.hbm [resolvable:$true] %s667_s15 }
  0x2f   : > { %s669_s30 = scalar_lea.hbm %s668_s15, 8  ;;  %p675_p5 = scmp.lt.s32.totalorder %s668_s15, %s996_s1 }
  0x30   : > { %p670_p8 = scmp.ne.s32.totalorder %s668_s15, %s669_s30  ;;  %p676_p11 = scmp.lt.s32.totalorder %s674_s8, %s669_s30 }
  0x32   : > { %p672_p10 = pnand %p670_p8, %p641_p9  ;;  %p677_p2 = por %p676_p11, %p675_p5 }
  0x34   : > { %p673_p12 = pneg %p672_p10 }
  0x36   : > { %p678_p4 = pnand %p677_p2, %p673_p12 }
  0x38   : > { %681 = shalt.err (!%p678_p4)
}
  0x39   : > { %555 = dma.hbm_to_vmem [thread:$0]  (!%p892_p7), %s258_s18, 128, %s260_s11, %s248_s24  }
  0x3a   : > { %268 = sbr.rel (%p841_p3) target bundleno = 478 (0x1de), region = 44  ;;  %s927_s2 = sand.u32 (!%p841_p3), 1, %s763_s22  }
  0x3b   : > { %s930_s14 = sshll.u32 (!%p841_p3), %s927_s2, 3  ;;  %s271_s20 = scalar_lea.sflag (!%p841_p3), [#allocation3], %s927_s2 }
  0x3c   : > { %s274_s7 = scalar_lea.vmem (!%p841_p3), [#allocation2], %s930_s14 }
  0x3f   : > { %742 = dma.done.wait (%p872_p13), %s271_s20, 128  }
  0x40   : > { %744 = vsyncadd (%p872_p13), %s271_s20, 4294967168  ;;  %s280_s24 = sand.u32 1, %s836_s28   ;;  %s284_s11 = scalar_lea.vmem [#allocation5], %s930_s14 }
  0x41   : > { %s281_s29 = scalar_lea.sflag [#allocation6], %s280_s24 }
  0x42   : > { %746 = dma.done.wait (%p872_p13), %s281_s29, 128  }
  0x43   : > { %748 = vsyncadd (%p872_p13), %s281_s29, 4294967168 }
  0x44   : > { %750 = dma.done.wait (%p46_p1), [#allocation6], 512  }
  0x45   : > { %752 = vsyncadd (%p46_p1), [#allocation6], 4294966784  ;;  %v328_v0 = vld [vmem:[#allocation7 + $0x18] sm:$0xff]  ;;  %v327_v1 = vld [vmem:[#allocation7 + $0x10] sm:$0xff]  ;;  %vm333_vm0 = vcmask 261120   ;;  %v776_v11 = vmov 32.0  }
  0x46   : > { %349 = vmatpush.msra.mxu0 %v328_v0  ;;  %v326_v2 = vld [vmem:[#allocation7 + $0x8] sm:$0xff]  ;;  %v325_v3 = vld [vmem:[#allocation7] sm:$0xff]  ;;  %v357_v7 = vld [vmem:[%s284_s11] sm:$0xff]  ;;  %603 = vrcp.f32 %v776_v11  ;;  %s532_s10 = sshll.u32 %s836_s28, 3  ;;  %s323_s28 = scalar_lea.vmem [#allocation8], %s930_s14 }
  0x47   : > { %v324_v4 = vld [vmem:[%s274_s7] sm:$0xff]  ;;  %s410_s30 = scalar_lea.hbm %s1001_s6, %s532_s10  ;;  %s412_s8 = sshll.u32 %s323_s28, 4  ;;  %s413_s8 = int_to_ptr.vmem [resolvable:$true] %s412_s8 }
  0x48   : > { %350 = vmatpush.msra.mxu0 %v327_v1  ;;  %v600_v5 = vld [vmem:[%s998_s3] ss:$0 sm:$0xff]  ;;  %s414_s12 = sshll.u32 %s410_s30, 4  ;;  %s400_s23 = scalar_lea.sflag [#allocation4], %s927_s2  ;;  %s415_s12 = int_to_ptr.hbm [resolvable:$true] %s414_s12 }
  0x49   : > { %v601_v32 = vld [vmem:[%s999_s4] ss:$0 sm:$0xff]  ;;  %s711_s20 = sshra.s32 %s415_s12, 4  ;;  %s717_s14 = scalar_lea.hbm %s1001_s6, 16  ;;  %s712_s20 = int_to_ptr.hbm [resolvable:$true] %s711_s20 }
  0x4a   : > { %351 = vmatpush.msra.mxu0 %v326_v2  ;;  %v602_v35 = vld [vmem:[%s1000_s5] ss:$0 sm:$0xff]  ;;  %s713_s7 = scalar_lea.hbm %s712_s20, 8  ;;  %p718_p7 = scmp.lt.s32.totalorder %s712_s20, %s1001_s6 }
  0x4b   : > { %p714_p1 = scmp.ne.s32.totalorder %s712_s20, %s713_s7  ;;  %p719_p9 = scmp.lt.s32.totalorder %s717_s14, %s713_s7 }
  0x4c   : > { %352 = vmatpush.msra.mxu0 %v325_v3  ;;  %v604_v12 = vpop.eup %603 }
  0x4d   : > { %530 = vmatmul.msk.f32.vlgmr.msra.gmra.mxu0 %vm333_vm0, %v324_v4  ;;  %v363_v13 = vmul.f32 32.0, %v604_v12  ;;  %vm367_vm1 = vweird.f32 %v604_v12  ;;  %p715_p3 = pnand %p714_p1, %p876_p0  ;;  %p720_p8 = por %p719_p9, %p718_p7 }
  0x4f   : > { %v364_v14 = vsub.f32 1.0, %v363_v13  ;;  %p716_p13 = pneg %p715_p3 }
  0x51   : > { %v365_v15 = vmul.f32 %v604_v12, %v364_v14  ;;  %p721_p10 = pnand %p720_p8, %p716_p13 }
  0x53   : > { %v366_v16 = vadd.f32 %v604_v12, %v365_v15 }
  0x55   : > { %v368_v17 = vsel %vm367_vm1, %v604_v12, %v366_v16 }
  0xca   : > { %v354_v6 = vpop.f32.mrf.mxu0 }
  0xcb   : > { %v355_v8 = vadd.f32 %v600_v5, %v354_v6 }
  0xcd   : > { %v358_v9 = vadd.f32 %v357_v7, %v355_v8 }
  0xcf   : > { %v359_v10 = vsel %vm333_vm0, %v358_v9, 0.0 }
  0xd0   : > { %360 = vadd.xlane.f32.xlu0 %v359_v10 }
 0x143   : > { %v361_v18 = vpop.xlane.xlu0 %360 }
 0x144   : > { %v369_v19 = vmul.f32 %v368_v17, %v361_v18 }
 0x146   : > { %v370_v20 = vsub.f32 %v358_v9, %v369_v19 }
 0x148   : > { %v371_v21 = vmul.f32 %v370_v20, %v370_v20 }
 0x14a   : > { %v372_v22 = vsel %vm333_vm0, %v371_v21, 0.0 }
 0x14b   : > { %373 = vadd.xlane.f32.xlu0 %v372_v22 }
 0x1be   : > { %v374_v23 = vpop.xlane.xlu0 %373 }
 0x1bf   : > { %v375_v24 = vmul.f32 %v374_v23, %v368_v17 }
 0x1c1   : > { %v376_v25 = vadd.f32 1e-12, %v375_v24 }
 0x1c3   : > { %605 = vrsqrt.f32 %v376_v25  ;;  %vm383_vm3 = vweird.f32 %v376_v25 }
 0x1c9   : > { %v606_v26 = vpop.eup %605 }
 0x1ca   : > { %v378_v27 = vmul.f32 %v606_v26, %v376_v25  ;;  %vm384_vm2 = vweird.f32 %v606_v26 }
 0x1cb   : > { %vm385_vm4 = vmor %vm383_vm3, %vm384_vm2 }
 0x1cc   : > { %v379_v28 = vmul.f32 %v606_v26, %v378_v27 }
 0x1ce   : > { %v380_v29 = vmul.f32 0.5, %v379_v28 }
 0x1d0   : > { %v381_v30 = vsub.f32 1.5, %v380_v29 }
 0x1d2   : > { %v382_v31 = vmul.f32 %v606_v26, %v381_v30 }
 0x1d4   : > { %v386_v33 = vsel %vm385_vm4, %v606_v26, %v382_v31 }
 0x1d5   : > { %v387_v34 = vmul.f32 %v386_v33, %v370_v20 }
 0x1d7   : > { %v392_v36 = vmul.f32 %v601_v32, %v387_v34 }
 0x1d9   : > { %v397_v37 = vadd.f32 %v602_v35, %v392_v36 }
 0x1db   : > { %398 = vst.msk [vmem:[%s323_s28] sm:$0xff] %vm333_vm0, %v397_v37 }
 0x1dc   : > { %724 = shalt.err (!%p721_p10)
}
 0x1dd   : > { %543 = dma.vmem_to_hbm [thread:$0]  (%p876_p0), %s413_s8, 128, %s415_s12, %s400_s23  }
 0x1de PF: > { %s1018_s2 = sld [smem:[#allocation14_spill]]  ;;  %s426_s9 = sand.u32 1, %s759_s21  }
 0x1df   : > { %s427_s10 = scalar_lea.sflag [#allocation4], %s426_s9 }
 0x1e4   : > { %p1019_p12 = scmp.ge.s32.totalorder %s1018_s2, 2 }
 0x1e6   : > { %p557_p5 = pnand %p1019_p12, %p882_p6 }
 0x1e8   : > { %p558_p11 = pneg %p557_p5 }
 0x1ea   : > { %754 = dma.done.wait (%p558_p11), %s427_s10, 128  }
 0x1eb   : > { %756 = vsyncadd (%p558_p11), %s427_s10, 4294967168  ;;  %s1020_s24 = sld [smem:[#allocation15_spill]]  ;;  %s1023_s21 = smov %s763_s22 }
 0x1ec   : > { %s1021_s13 = sld [smem:[#allocation13_spill]] }
 0x1ed   : > { %s1022_s23 = sld [smem:[#allocation16_spill]] }
 0x1f1   : > { %p22_p2 = scmp.ge.s32.totalorder %s1020_s24, 4  }
 0x1f2   : > { %s1024_s22 = smov %s1021_s13 }
 0x1f3   :  { %24 = sbr.rel (!%p22_p2) target bundleno = 9 (0x9), region = 106 }
 0x1f8   :  { %433 = vsyncpa [#allocation3], 1 }
 0x1f9   :  { %435 = vsyncpa [#allocation3 + $0x1], 1 }
 0x1fa   :  { %436 = vsyncpa [#allocation6], 1 }
 0x1fb   :  { %438 = vsyncpa [#allocation6 + $0x1], 1 }
 0x1fc   :  { %439 = vsyncpa [#allocation4], 1 }
 0x1fd   :  { %441 = vsyncpa [#allocation4 + $0x1], 1 }

// kernel: tpu_custom_call.1
= control target key start
LH: loop header
LB: loop body
LE: loop exit
PB: predicated region body
PF: predicated region fallthrough
CT: control target
= control target key end

     0   :  { %s995_s0 = inlined_call_operand.hbm [shape: f32[16,32], index: 0, kind: input, shape index: {}]   ;;  %s996_s1 = inlined_call_operand.hbm [shape: f32[16,32], index: 1, kind: input, shape index: {}]   ;;  %s997_s2 = inlined_call_operand.hbm [shape: f32[32,32], index: 2, kind: input, shape index: {}]   ;;  %s998_s3 = inlined_call_operand.vmem [shape: f32[1,32], index: 3, kind: input, shape index: {}]   ;;  %s999_s4 = inlined_call_operand.vmem [shape: f32[1,32], index: 4, kind: input, shape index: {}]   ;;  %s1000_s5 = inlined_call_operand.vmem [shape: f32[1,32], index: 5, kind: input, shape index: {}]   ;;  %s1001_s6 = inlined_call_operand.hbm [shape: f32[16,32], index: 6, kind: output, shape index: {}]  }
   0x1   :  { %1006 = sst [smem:[#allocation17_spill]] %s997_s2 }
   0x2   :  { %11 = vsyncpa [#allocation3], 0 }
   0x3   :  { %13 = vsyncpa [#allocation3 + $0x1], 0 }
   0x4   :  { %14 = vsyncpa [#allocation6], 0 }
   0x5   :  { %16 = vsyncpa [#allocation6 + $0x1], 0 }
   0x6   :  { %17 = vsyncpa [#allocation4], 0 }
   0x7   :  { %19 = vsyncpa [#allocation4 + $0x1], 0  ;;  %s812_s21 = smov 0   ;;  %s814_s22 = smov 0  }
   0x8   :  { %s816_s23 = smov 0   ;;  %s818_s24 = smov 0  }
   0x9 LB: > { %1007 = sst [smem:[#allocation13_spill]] %s767_s23  ;;  %s836_s28 = sadd.s32 4294967295, %s771_s24   ;;  %s771_s24 = sphi %s818_s24, %s1020_s24   ;;  %s767_s23 = sphi %s816_s23, %s1022_s23   ;;  %s763_s22 = sphi %s814_s22, %s1024_s22   ;;  %s759_s21 = sphi %s812_s21, %s1023_s21  }
   0xa   : > { %1008 = sst [smem:[#allocation14_spill]] %s771_s24  ;;  %p518_p0 = scmp.ge.s32.totalorder %s771_s24, 1 }
   0xb   : > { %s1009_s2 = sld [smem:[#allocation17_spill]]  ;;  %p46_p1 = scmp.eq.s32.totalorder %s836_s28, 0 }
   0xc   : > { %p192_p2 = scmp.lt.s32.totalorder %s771_s24, 3  ;;  %s773_s30 = smov [#allocation7]  }
   0xd   : > { %s205_s7 = sshll.u32 %s773_s30, 4  ;;  %s774_s8 = smov 128   ;;  %s206_s7 = int_to_ptr.vmem [resolvable:$true] %s205_s7 }
   0xe   : > { %p841_p3 = pnand %p518_p0, %p192_p2  ;;  %s775_s9 = smov 8  }
   0xf   : > { %s517_s10 = sadd.s32 4294967294, %s771_s24   ;;  %s852_s11 = sadd.s32 1, %s771_s24  }
  0x10   : > { %p545_p4 = pneg %p841_p3  ;;  %1011 = sst [smem:[#allocation15_spill]] %s852_s11 }
  0x11   : > { %s203_s27 = sshll.u32 %s1009_s2, 4  ;;  %s32_s12 = sadd.s32 1, %s767_s23  ;;  %s204_s27 = int_to_ptr.hbm [resolvable:$true] %s203_s27 }
  0x12   : > { %p546_p6 = pnand %p545_p4, %p46_p1  ;;  %s29_s13 = ssub.s32 %s771_s24, %s852_s11 }
  0x13   : > { %p39_p7 = scmp.ne.s32.totalorder %s767_s23, %s763_s22  ;;  %p30_p8 = scmp.eq.s32.totalorder %s29_s13, 0 }
  0x14   : > { %548 = dma.hbm_to_vmem [thread:$0]  (!%p546_p6), %s204_s27, 512, %s206_s7, [#allocation6], %s774_s8, %s774_s8, %s775_s9  }
  0x15   : > { %p40_p9 = scmp.eq.s32.totalorder %s771_s24, 0  ;;  %p45_p10 = scmp.ne.s32.totalorder %s763_s22, %s759_s21 }
  0x16   : > { %p179_p11 = scmp.eq.s32.totalorder %s836_s28, 1  ;;  %p185_p2 = scmp.eq.s32.totalorder %s517_s10, 1 }
  0x17   : > { %s864_s14 = scalar_select %p30_p8, %s767_s23, %s32_s12  }
  0x18   : > { %p866_p12 = por %p40_p9, %p39_p7  ;;  %p872_p13 = por %p46_p1, %p45_p10 }
  0x19   : > { %1012 = sst [smem:[#allocation16_spill]] %s864_s14  ;;  %p876_p0 = por %p179_p11, %p39_p7 }
  0x1a   : > { %p561_p4 = scmp.lt.s32.totalorder %s771_s24, 2  ;;  %s228_s18 = sand.u32 1, %s767_s23  }
  0x1b   : > { %p882_p6 = por %p185_p2, %p45_p10  ;;  %s521_s20 = sshll.u32 %s228_s18, 3 }
  0x1c   : > { %s522_s25 = sshll.u32 %s771_s24, 3  ;;  %s232_s8 = scalar_lea.vmem [#allocation2], %s521_s20 }
  0x1d   : > { %s236_s30 = scalar_lea.hbm %s995_s0, %s522_s25  ;;  %s240_s9 = sshll.u32 %s232_s8, 4  ;;  %s241_s9 = int_to_ptr.vmem [resolvable:$true] %s240_s9 }
  0x1e   : > { %s238_s7 = sshll.u32 %s236_s30, 4  ;;  %p892_p7 = pnand %p561_p4, %p866_p12  ;;  %s239_s7 = int_to_ptr.hbm [resolvable:$true] %s238_s7 }
  0x1f   : > { %s255_s2 = scalar_lea.hbm %s996_s1, %s522_s25  ;;  %s247_s14 = sand.u32 1, %s771_s24  }
  0x20   : > { %s229_s23 = scalar_lea.sflag [#allocation3], %s228_s18  ;;  %s637_s26 = sshra.s32 %s239_s7, 4  ;;  %s638_s26 = int_to_ptr.hbm [resolvable:$true] %s637_s26 }
  0x21   : > { %s639_s27 = scalar_lea.hbm %s638_s26, 8  ;;  %p641_p9 = pneg %p892_p7 }
  0x22   : > { %p640_p8 = scmp.ne.s32.totalorder %s638_s26, %s639_s27  ;;  %s644_s8 = scalar_lea.hbm %s995_s0, 16 }
  0x23   : > { %p645_p12 = scmp.lt.s32.totalorder %s638_s26, %s995_s0  ;;  %p646_p2 = scmp.lt.s32.totalorder %s644_s8, %s639_s27 }
  0x24   : > { %p642_p10 = pnand %p641_p9, %p640_p8 }
  0x25   : > { %p647_p4 = por %p646_p2, %p645_p12 }
  0x26   : > { %p643_p11 = pneg %p642_p10 }
  0x28   : > { %p648_p5 = pnand %p647_p4, %p643_p11 }
  0x2a   : > { %651 = shalt.err (!%p648_p5)
}
  0x2b   : > { %552 = dma.hbm_to_vmem [thread:$0]  (!%p892_p7), %s239_s7, 128, %s241_s9, %s229_s23  }
  0x2c   : > { %s257_s18 = sshll.u32 %s255_s2, 4  ;;  %s251_s25 = scalar_lea.vmem [#allocation5], %s521_s20  ;;  %s258_s18 = int_to_ptr.hbm [resolvable:$true] %s257_s18 }
  0x2d   : > { %s259_s11 = sshll.u32 %s251_s25, 4  ;;  %s248_s24 = scalar_lea.sflag [#allocation6], %s247_s14  ;;  %s260_s11 = int_to_ptr.vmem [resolvable:$true] %s259_s11 }
  0x2e   : > { %s667_s15 = sshra.s32 %s258_s18, 4  ;;  %s674_s8 = scalar_lea.hbm %s996_s1, 16  ;;  %s668_s15 = int_to_ptr.hbm [resolvable:$true] %s667_s15 }
  0x2f   : > { %s669_s30 = scalar_lea.hbm %s668_s15, 8  ;;  %p675_p5 = scmp.lt.s32.totalorder %s668_s15, %s996_s1 }
  0x30   : > { %p670_p8 = scmp.ne.s32.totalorder %s668_s15, %s669_s30  ;;  %p676_p11 = scmp.lt.s32.totalorder %s674_s8, %s669_s30 }
  0x32   : > { %p672_p10 = pnand %p670_p8, %p641_p9  ;;  %p677_p2 = por %p676_p11, %p675_p5 }
  0x34   : > { %p673_p12 = pneg %p672_p10 }
  0x36   : > { %p678_p4 = pnand %p677_p2, %p673_p12 }
  0x38   : > { %681 = shalt.err (!%p678_p4)
}
  0x39   : > { %555 = dma.hbm_to_vmem [thread:$0]  (!%p892_p7), %s258_s18, 128, %s260_s11, %s248_s24  }
  0x3a   : > { %268 = sbr.rel (%p841_p3) target bundleno = 478 (0x1de), region = 44  ;;  %s927_s2 = sand.u32 (!%p841_p3), 1, %s763_s22  }
  0x3b   : > { %s930_s14 = sshll.u32 (!%p841_p3), %s927_s2, 3  ;;  %s271_s20 = scalar_lea.sflag (!%p841_p3), [#allocation3], %s927_s2 }
  0x3c   : > { %s274_s7 = scalar_lea.vmem (!%p841_p3), [#allocation2], %s930_s14 }
  0x3f   : > { %742 = dma.done.wait (%p872_p13), %s271_s20, 128  }
  0x40   : > { %744 = vsyncadd (%p872_p13), %s271_s20, 4294967168  ;;  %s280_s24 = sand.u32 1, %s836_s28   ;;  %s284_s11 = scalar_lea.vmem [#allocation5], %s930_s14 }
  0x41   : > { %s281_s29 = scalar_lea.sflag [#allocation6], %s280_s24 }
  0x42   : > { %746 = dma.done.wait (%p872_p13), %s281_s29, 128  }
  0x43   : > { %748 = vsyncadd (%p872_p13), %s281_s29, 4294967168 }
  0x44   : > { %750 = dma.done.wait (%p46_p1), [#allocation6], 512  }
  0x45   : > { %752 = vsyncadd (%p46_p1), [#allocation6], 4294966784  ;;  %v328_v0 = vld [vmem:[#allocation7 + $0x18] sm:$0xff]  ;;  %v327_v1 = vld [vmem:[#allocation7 + $0x10] sm:$0xff]  ;;  %vm333_vm0 = vcmask 261120   ;;  %v776_v11 = vmov 32.0  }
  0x46   : > { %349 = vmatpush.msra.mxu0 %v328_v0  ;;  %v326_v2 = vld [vmem:[#allocation7 + $0x8] sm:$0xff]  ;;  %v325_v3 = vld [vmem:[#allocation7] sm:$0xff]  ;;  %v357_v7 = vld [vmem:[%s284_s11] sm:$0xff]  ;;  %603 = vrcp.f32 %v776_v11  ;;  %s532_s10 = sshll.u32 %s836_s28, 3  ;;  %s323_s28 = scalar_lea.vmem [#allocation8], %s930_s14 }
  0x47   : > { %v324_v4 = vld [vmem:[%s274_s7] sm:$0xff]  ;;  %s410_s30 = scalar_lea.hbm %s1001_s6, %s532_s10  ;;  %s412_s8 = sshll.u32 %s323_s28, 4  ;;  %s413_s8 = int_to_ptr.vmem [resolvable:$true] %s412_s8 }
  0x48   : > { %350 = vmatpush.msra.mxu0 %v327_v1  ;;  %v600_v5 = vld [vmem:[%s998_s3] ss:$0 sm:$0xff]  ;;  %s414_s12 = sshll.u32 %s410_s30, 4  ;;  %s400_s23 = scalar_lea.sflag [#allocation4], %s927_s2  ;;  %s415_s12 = int_to_ptr.hbm [resolvable:$true] %s414_s12 }
  0x49   : > { %v601_v32 = vld [vmem:[%s999_s4] ss:$0 sm:$0xff]  ;;  %s711_s20 = sshra.s32 %s415_s12, 4  ;;  %s717_s14 = scalar_lea.hbm %s1001_s6, 16  ;;  %s712_s20 = int_to_ptr.hbm [resolvable:$true] %s711_s20 }
  0x4a   : > { %351 = vmatpush.msra.mxu0 %v326_v2  ;;  %v602_v35 = vld [vmem:[%s1000_s5] ss:$0 sm:$0xff]  ;;  %s713_s7 = scalar_lea.hbm %s712_s20, 8  ;;  %p718_p7 = scmp.lt.s32.totalorder %s712_s20, %s1001_s6 }
  0x4b   : > { %p714_p1 = scmp.ne.s32.totalorder %s712_s20, %s713_s7  ;;  %p719_p9 = scmp.lt.s32.totalorder %s717_s14, %s713_s7 }
  0x4c   : > { %352 = vmatpush.msra.mxu0 %v325_v3  ;;  %v604_v12 = vpop.eup %603 }
  0x4d   : > { %530 = vmatmul.msk.f32.vlgmr.msra.gmra.mxu0 %vm333_vm0, %v324_v4  ;;  %v363_v13 = vmul.f32 32.0, %v604_v12  ;;  %vm367_vm1 = vweird.f32 %v604_v12  ;;  %p715_p3 = pnand %p714_p1, %p876_p0  ;;  %p720_p8 = por %p719_p9, %p718_p7 }
  0x4f   : > { %v364_v14 = vsub.f32 1.0, %v363_v13  ;;  %p716_p13 = pneg %p715_p3 }
  0x51   : > { %v365_v15 = vmul.f32 %v604_v12, %v364_v14  ;;  %p721_p10 = pnand %p720_p8, %p716_p13 }
  0x53   : > { %v366_v16 = vadd.f32 %v604_v12, %v365_v15 }
  0x55   : > { %v368_v17 = vsel %vm367_vm1, %v604_v12, %v366_v16 }
  0xca   : > { %v354_v6 = vpop.f32.mrf.mxu0 }
  0xcb   : > { %v355_v8 = vadd.f32 %v600_v5, %v354_v6 }
  0xcd   : > { %v358_v9 = vadd.f32 %v357_v7, %v355_v8 }
  0xcf   : > { %v359_v10 = vsel %vm333_vm0, %v358_v9, 0.0 }
  0xd0   : > { %360 = vadd.xlane.f32.xlu0 %v359_v10 }
 0x143   : > { %v361_v18 = vpop.xlane.xlu0 %360 }
 0x144   : > { %v369_v19 = vmul.f32 %v368_v17, %v361_v18 }
 0x146   : > { %v370_v20 = vsub.f32 %v358_v9, %v369_v19 }
 0x148   : > { %v371_v21 = vmul.f32 %v370_v20, %v370_v20 }
 0x14a   : > { %v372_v22 = vsel %vm333_vm0, %v371_v21, 0.0 }
 0x14b   : > { %373 = vadd.xlane.f32.xlu0 %v372_v22 }
 0x1be   : > { %v374_v23 = vpop.xlane.xlu0 %373 }
 0x1bf   : > { %v375_v24 = vmul.f32 %v374_v23, %v368_v17 }
 0x1c1   : > { %v376_v25 = vadd.f32 1e-12, %v375_v24 }
 0x1c3   : > { %605 = vrsqrt.f32 %v376_v25  ;;  %vm383_vm3 = vweird.f32 %v376_v25 }
 0x1c9   : > { %v606_v26 = vpop.eup %605 }
 0x1ca   : > { %v378_v27 = vmul.f32 %v606_v26, %v376_v25  ;;  %vm384_vm2 = vweird.f32 %v606_v26 }
 0x1cb   : > { %vm385_vm4 = vmor %vm383_vm3, %vm384_vm2 }
 0x1cc   : > { %v379_v28 = vmul.f32 %v606_v26, %v378_v27 }
 0x1ce   : > { %v380_v29 = vmul.f32 0.5, %v379_v28 }
 0x1d0   : > { %v381_v30 = vsub.f32 1.5, %v380_v29 }
 0x1d2   : > { %v382_v31 = vmul.f32 %v606_v26, %v381_v30 }
 0x1d4   : > { %v386_v33 = vsel %vm385_vm4, %v606_v26, %v382_v31 }
 0x1d5   : > { %v387_v34 = vmul.f32 %v386_v33, %v370_v20 }
 0x1d7   : > { %v392_v36 = vmul.f32 %v601_v32, %v387_v34 }
 0x1d9   : > { %v397_v37 = vadd.f32 %v602_v35, %v392_v36 }
 0x1db   : > { %398 = vst.msk [vmem:[%s323_s28] sm:$0xff] %vm333_vm0, %v397_v37 }
 0x1dc   : > { %724 = shalt.err (!%p721_p10)
}
 0x1dd   : > { %543 = dma.vmem_to_hbm [thread:$0]  (%p876_p0), %s413_s8, 128, %s415_s12, %s400_s23  }
 0x1de PF: > { %s1018_s2 = sld [smem:[#allocation14_spill]]  ;;  %s426_s9 = sand.u32 1, %s759_s21  }
 0x1df   : > { %s427_s10 = scalar_lea.sflag [#allocation4], %s426_s9 }
 0x1e4   : > { %p1019_p12 = scmp.ge.s32.totalorder %s1018_s2, 2 }
 0x1e6   : > { %p557_p5 = pnand %p1019_p12, %p882_p6 }
 0x1e8   : > { %p558_p11 = pneg %p557_p5 }
 0x1ea   : > { %754 = dma.done.wait (%p558_p11), %s427_s10, 128  }
 0x1eb   : > { %756 = vsyncadd (%p558_p11), %s427_s10, 4294967168  ;;  %s1020_s24 = sld [smem:[#allocation15_spill]]  ;;  %s1023_s21 = smov %s763_s22 }
 0x1ec   : > { %s1021_s13 = sld [smem:[#allocation13_spill]] }
 0x1ed   : > { %s1022_s23 = sld [smem:[#allocation16_spill]] }
 0x1f1   : > { %p22_p2 = scmp.ge.s32.totalorder %s1020_s24, 4  }
 0x1f2   : > { %s1024_s22 = smov %s1021_s13 }
 0x1f3   :  { %24 = sbr.rel (!%p22_p2) target bundleno = 9 (0x9), region = 106 }
 0x1f8   :  { %433 = vsyncpa [#allocation3], 1 }
 0x1f9   :  { %435 = vsyncpa [#allocation3 + $0x1], 1 }
 0x1fa   :  { %436 = vsyncpa [#allocation6], 1 }
 0x1fb   :  { %438 = vsyncpa [#allocation6 + $0x1], 1 }
 0x1fc   :  { %439 = vsyncpa [#allocation4], 1 }
 0x1fd   :  { %441 = vsyncpa [#allocation4 + $0x1], 1 }

</bundles_post_ra>
